<compile_context>
chip_gen: v5e
topology: v5e:2x2
jax: 0.10.0
libtpu: 0.0.40
codegen_flags: <defaults>
</compile_context>

<pallas_src>
import functools

import jax
import jax.numpy as jnp
from jax.experimental import pallas as pl
from jax.experimental.pallas import tpu as pltpu

_LANE = 128
_MAX_TILE_N = 1024


def _round_up(x, m):
    return ((x + m - 1) // m) * m


def _round_down(x, m):
    return (x // m) * m


# ---------------------------------------------------------------------------
# Kernels
# ---------------------------------------------------------------------------

def gcrn_gru_kernel(x_ref, h_ref, wx_ref, whzr_ref, whh_ref, b_ref, out_ref):
    """Full GRU step on one node tile.

    wx   = [Wxz | Wxr | Wxh]   (Dp, 3Dp)
    whzr = [Whz | Whr]         (Dp, 2Dp)
    whh  = Whh                 (Dp, Dp)
    b    = [bz | br | bh]      (1, 3Dp) f32, with bz = b_x_z + b_h_z etc.
    """
    D = out_ref.shape[1]
    x = x_ref[...]
    h = h_ref[...]
    h32 = h.astype(jnp.float32)

    # Fused gate matmuls; accumulation in f32 regardless of operand dtype.
    gx = jnp.dot(x, wx_ref[...], preferred_element_type=jnp.float32) + b_ref[...]
    gh = jnp.dot(h, whzr_ref[...], preferred_element_type=jnp.float32)

    z = jax.nn.sigmoid(gx[:, :D] + gh[:, :D])
    r = jax.nn.sigmoid(gx[:, D:2 * D] + gh[:, D:])
    hr = (h32 * r).astype(h.dtype)
    h_tilde = jnp.tanh(
        gx[:, 2 * D:]
        + jnp.dot(hr, whh_ref[...], preferred_element_type=jnp.float32))

    h_new = z * h32 + (1.0 - z) * h_tilde
    # post_layer: ReLU (Dropout(p=0.0) is identity)
    out_ref[...] = jnp.maximum(h_new, 0.0).astype(out_ref.dtype)


def gcrn_gru_kernel_h0(x_ref, wx_ref, b_ref, out_ref):
    """H == 0 special case: h*r == 0, so the h-side matmuls vanish.
    wx = [Wxz | Wxh] (Dp, 2Dp), b = [bz | bh] (1, 2Dp) (h-side biases included)."""
    D = out_ref.shape[1]
    g = jnp.dot(x_ref[...], wx_ref[...],
                preferred_element_type=jnp.float32) + b_ref[...]
    z = jax.nn.sigmoid(g[:, :D])
    h_tilde = jnp.tanh(g[:, D:])
    out_ref[...] = jnp.maximum((1.0 - z) * h_tilde, 0.0).astype(out_ref.dtype)


# ---------------------------------------------------------------------------
# Parameter packing (do this ONCE, outside any recurrent loop)
# ---------------------------------------------------------------------------

def pack_params(params, *, compute_dtype=jnp.float32):
    """Fuse + lane-pad the six ChebConv(K=1) weight/bias pairs once."""
    D = params["W_x_z"].shape[0]
    Dp = _round_up(D, _LANE)
    cd = jnp.dtype(compute_dtype)

    def padw(w):
        w = w.astype(cd)
        if Dp == D:
            return w
        return jnp.zeros((Dp, Dp), cd).at[:D, :D].set(w)

    def padb(b):
        b = b.astype(jnp.float32)
        if Dp == D:
            return b
        return jnp.zeros((Dp,), jnp.float32).at[:D].set(b)

    # Exact algebraic bias merge: conv_x_*(x) + conv_h_*(h) contributes
    # b_x_* + b_h_* (true also when H == 0: the h-side bias is still added).
    bz = padb(params["b_x_z"] + params["b_h_z"])
    br = padb(params["b_x_r"] + params["b_h_r"])
    bh = padb(params["b_x_h"] + params["b_h_h"])

    wxz, wxr, wxh = padw(params["W_x_z"]), padw(params["W_x_r"]), padw(params["W_x_h"])
    whz, whr, whh = padw(params["W_h_z"]), padw(params["W_h_r"]), padw(params["W_h_h"])

    # TODO(synk): optional fp8 weight packing for v7x (only pays off at very large D).
    return {
        "D": D, "Dp": Dp, "dtype": cd,
        # full-GRU path
        "wx3": jnp.concatenate([wxz, wxr, wxh], axis=1),          # (Dp, 3Dp)
        "whzr": jnp.concatenate([whz, whr], axis=1),              # (Dp, 2Dp)
        "whh": whh,                                               # (Dp, Dp)
        "b3": jnp.concatenate([bz, br, bh]).reshape(1, 3 * Dp),   # (1, 3Dp) f32
        # H == None fast path
        "wx2": jnp.concatenate([wxz, wxh], axis=1),               # (Dp, 2Dp)
        "b2": jnp.concatenate([bz, bh]).reshape(1, 2 * Dp),       # (1, 2Dp) f32
    }


# ---------------------------------------------------------------------------
# Generation-aware VMEM / tile planning
# ---------------------------------------------------------------------------

def _tpu_caps():
    """(per-TensorCore VMEM bytes, device has 2 TensorCores behind one core)."""
    vmem_cap = 64 << 20      # conservative default (v7x per-TC)
    multi_core = False
    kind = ""
    try:
        kind = jax.devices()[0].device_kind.lower()
    except Exception:
        pass
    if "v7" in kind:
        vmem_cap, multi_core = 64 << 20, True
    elif ("v4" in kind) or ("v5p" in kind):
        vmem_cap, multi_core = 64 << 20, True       # megacore; stay conservative
    elif kind:
        vmem_cap, multi_core = 128 << 20, False     # v5e / v6e (single TC)
    else:
        try:
            info = pltpu.get_tpu_info()
            vmem_cap = int(getattr(info, "vmem_capacity_bytes", vmem_cap)) or vmem_cap
        except Exception:
            pass
    return vmem_cap, multi_core


def _plan(n_nodes, Dp, comp_itemsize, out_itemsize, full_gru, tile_n=None):
    vmem_cap, multi_core = _tpu_caps()
    budget = (vmem_cap * 3) // 4          # headroom for compiler-internal scratch

    # Weights + bias: pl.Buffered(1) -> a single resident copy.
    n_wmats = 6 if full_gru else 2
    n_bcols = 3 if full_gru else 2
    weight_bytes = n_wmats * Dp * Dp * comp_itemsize + n_bcols * Dp * 4

    # Per-node-row VMEM: double-buffered x (and h), double-buffered out, plus
    # the f32 matmul intermediates (gx 3Dp + gh 2Dp + hr/h_tilde ~1Dp).
    n_in_streams = 2 if full_gru else 1
    per_row = (2 * n_in_streams * Dp * comp_itemsize
               + 2 * Dp * out_itemsize
               + (6 if full_gru else 3) * Dp * 4)

    if tile_n is None:
        rows_budget = max(budget - weight_bytes, 1 << 20)
        max_rows = min(max(_round_down(rows_budget // per_row, 8), 8), _MAX_TILE_N)
        n8 = _round_up(max(n_nodes, 8), 8)
        if multi_core and n8 >= 16:
            # >=2 grid steps so dimension_semantics=('parallel',) feeds both TCs.
            tile = min(max_rows, _round_up((n8 + 1) // 2, 8))
        else:
            tile = min(max_rows, n8)      # single TC: one biggest tile that fits
    else:
        tile = _round_up(int(tile_n), 8)

    n_pad = _round_up(max(n_nodes, tile), tile)
    vmem_limit = int(weight_bytes + tile * per_row + (4 << 20))
    vmem_limit = max(min(vmem_limit, budget), 16 << 20)
    return tile, n_pad, vmem_limit


# ---------------------------------------------------------------------------
# Forward wrapper
# ---------------------------------------------------------------------------

def gcrn_layer_forward(x, edge_index, params, edge_weight=None, H=None, *,
                       tile_n=None, use_bf16=False, donate_h=False):
    """GCRNLayer.forward.

    edge_index / edge_weight are accepted for API parity but unused: ChebConv
    with K=1 has no graph-propagation term.  `params` may be the raw per-gate
    dict (see init_params) or the prepacked dict from pack_params(); prepack
    once outside a recurrent loop to avoid re-fusing weights every timestep.
    """
    del edge_index, edge_weight
    N, D_in = x.shape
    out_dtype = x.dtype

    if "wx3" not in params:   # raw params -> pack on the fly (convenience path)
        comp_req = jnp.bfloat16 if use_bf16 else x.dtype
        params = pack_params(params, compute_dtype=comp_req)
    D, Dp, comp = params["D"], params["Dp"], params["dtype"]
    assert D_in == D, f"hidden_dim mismatch: x has {D_in}, params have {D}"

    full_gru = H is not None
    tile, n_pad, vmem_limit = _plan(
        N, Dp, jnp.dtype(comp).itemsize, jnp.dtype(out_dtype).itemsize,
        full_gru, tile_n)
    grid = (n_pad // tile,)

    def pad_nodes(a):
        if n_pad == N and Dp == D and a.dtype == comp:
            return a
        return jnp.zeros((n_pad, Dp), comp).at[:N, :D].set(a.astype(comp))

    node_spec = pl.BlockSpec((tile, Dp), lambda i: (i, 0))
    compiler_params = pltpu.CompilerParams(
        dimension_semantics=("parallel",), vmem_limit_bytes=vmem_limit)

    def const_spec(shape, single_buffer):
        # Constant-index weight/bias blocks: the second pipeline buffer is dead
        # VMEM -> request single buffering; fall back to default if unsupported.
        if single_buffer:
            return pl.BlockSpec(shape, lambda i: (0, 0),
                                pipeline_mode=pl.Buffered(1))
        return pl.BlockSpec(shape, lambda i: (0, 0))

    x_p = pad_nodes(x)

    if not full_gru:
        args = (x_p, params["wx2"], params["b2"])

        def call(single_buffer):
            return pl.pallas_call(
                gcrn_gru_kernel_h0,
                out_shape=jax.ShapeDtypeStruct((n_pad, Dp), out_dtype),
                grid_spec=pltpu.PrefetchScalarGridSpec(
                    num_scalar_prefetch=0,
                    grid=grid,
                    in_specs=[node_spec,
                              const_spec((Dp, 2 * Dp), single_buffer),
                              const_spec((1, 2 * Dp), single_buffer)],
                    out_specs=node_spec),
                compiler_params=compiler_params,
            )(*args)
    else:
        h_p = pad_nodes(H)
        args = (x_p, h_p, params["wx3"], params["whzr"], params["whh"],
                params["b3"])
        aliases = {}
        if donate_h and h_p.dtype == out_dtype:
            aliases = {1: 0}    # reuse the (padded) H buffer for the output

        def call(single_buffer):
            return pl.pallas_call(
                gcrn_gru_kernel,
                out_shape=jax.ShapeDtypeStruct((n_pad, Dp), out_dtype),
                grid_spec=pltpu.PrefetchScalarGridSpec(
                    num_scalar_prefetch=0,
                    grid=grid,
                    in_specs=[node_spec, node_spec,
                              const_spec((Dp, 3 * Dp), single_buffer),
                              const_spec((Dp, 2 * Dp), single_buffer),
                              const_spec((Dp, Dp), single_buffer),
                              const_spec((1, 3 * Dp), single_buffer)],
                    out_specs=node_spec),
                compiler_params=compiler_params,
                input_output_aliases=aliases,
            )(*args)

    try:
        out = call(True)
    except Exception:            # jax without BlockSpec pipeline_mode support
        out = call(False)

    if n_pad == N and Dp == D:
        return out
    return out[:N, :D]


# ---------------------------------------------------------------------------
# Params / reference
# ---------------------------------------------------------------------------

def init_params(key, hidden_dim):
    """Glorot-style init matching ChebConv(K=1) parameter shapes:
    each of the 6 ChebConvs owns one (D, D) weight and one (D,) bias."""
    names_w = ["W_x_z", "W_h_z", "W_x_r", "W_h_r", "W_x_h", "W_h_h"]
    names_b = ["b_x_z", "b_h_z", "b_x_r", "b_h_r", "b_x_h", "b_h_h"]
    keys = jax.random.split(key, len(names_w) + len(names_b))
    scale = jnp.sqrt(6.0 / (hidden_dim + hidden_dim))
    params = {}
    for i, n in enumerate(names_w):
        params[n] = jax.random.uniform(
            keys[i], (hidden_dim, hidden_dim), jnp.float32, -scale, scale)
    for j, n in enumerate(names_b):
        params[n] = jax.random.uniform(
            keys[len(names_w) + j], (hidden_dim,), jnp.float32, -0.1, 0.1)
    return params


def _reference(x, params, H=None):
    """Pure-JAX reference of the same math (GConvGRU K=1 + ReLU)."""
    if H is None:
        H = jnp.zeros(x.shape, x.dtype)
    z = jax.nn.sigmoid(x @ params["W_x_z"] + params["b_x_z"]
                       + H @ params["W_h_z"] + params["b_h_z"])
    r = jax.nn.sigmoid(x @ params["W_x_r"] + params["b_x_r"]
                       + H @ params["W_h_r"] + params["b_h_r"])
    h_tilde = jnp.tanh(x @ params["W_x_h"] + params["b_x_h"]
                       + (H * r) @ params["W_h_h"] + params["b_h_h"])
    h_new = z * H + (1.0 - z) * h_tilde
    return jnp.maximum(h_new, 0.0)


# ---------------------------------------------------------------------------
# Demo / self-check
# ---------------------------------------------------------------------------

if __name__ == "__main__":
    key = jax.random.PRNGKey(0)
    hidden_dim = 32
    num_nodes = 64

    k_x, k_h, k_p = jax.random.split(key, 3)
    x = jax.random.normal(k_x, (num_nodes, hidden_dim), jnp.float32)
    h0 = jax.random.normal(k_h, (num_nodes, hidden_dim), jnp.float32)
    # Simple ring graph — unused by the math (K=1), kept for interface parity.
    src = jnp.arange(num_nodes, dtype=jnp.int32)
    dst = (src + 1) % num_nodes
    edge_index = jnp.stack([src, dst], axis=0)

    params = init_params(k_p, hidden_dim)
    packed_f32 = pack_params(params)                              # once, outside any loop
    packed_bf16 = pack_params(params, compute_dtype=jnp.bfloat16)

    fwd = functools.partial(gcrn_layer_forward, edge_index=edge_index)

    # 1) H=None fast path, prepacked f32 weights
    out0 = jax.block_until_ready(fwd(x, params=packed_f32, H=None))
    ref0 = _reference(x, params, H=None)
    assert out0.shape == (num_nodes, hidden_dim)
    assert jnp.allclose(out0, ref0, atol=1e-5, rtol=1e-5), "mismatch (H=None, f32)"

    # 2) Full GRU path, prepacked f32 weights
    out1 = jax.block_until_ready(fwd(x, params=packed_f32, H=h0))
    ref1 = _reference(x, params, H=h0)
    assert jnp.allclose(out1, ref1, atol=1e-5, rtol=1e-5), "mismatch (H given, f32)"

    # 3) Raw (unpacked) params convenience path
    out2 = jax.block_until_ready(fwd(x, params=params, H=h0))
    assert jnp.allclose(out2, ref1, atol=1e-5, rtol=1e-5), "mismatch (raw params)"

    # 4) bf16 MXU operands (f32 accumulate + f32 gate math) — looser tolerance
    out3 = jax.block_until_ready(fwd(x, params=packed_bf16, H=h0))
    assert jnp.allclose(out3, ref1, atol=5e-2, rtol=0.0), "mismatch (bf16)"

    print("KERNEL_OK")
</pallas_src>

<mosaic_0001>
module attributes {stable_mosaic.version = 11 : i64} {
  func.func @gcrn_gru_kernel_h0(%arg0: i32, %arg1: memref<64x128xf32, #tpu.memory_space<vmem>>, %arg2: memref<128x256xf32, #tpu.memory_space<vmem>>, %arg3: memref<1x256xf32, #tpu.memory_space<vmem>>, %arg4: memref<64x128xf32, #tpu.memory_space<vmem>>) attributes {dimension_semantics = [#tpu.dimension_semantics<parallel>], iteration_bounds = array<i64: 1>, scalar_prefetch = 0 : i64, scratch_operands = 0 : i64, tpu.core_type = #tpu.core_type<tc>, window_params = [{transform_indices = @transform_0, window_bounds = array<i64: 64, 128>}, {pipeline_mode = #tpu.pipeline_mode<synchronous>, transform_indices = @transform_1, window_bounds = array<i64: 128, 256>}, {pipeline_mode = #tpu.pipeline_mode<synchronous>, transform_indices = @transform_2, window_bounds = array<i64: 1, 256>}, {transform_indices = @transform_3, window_bounds = array<i64: 64, 128>}]} {
    %c0 = arith.constant 0 : index
    %c0_0 = arith.constant 0 : index
    %0 = vector.load %arg1[%c0, %c0_0] : memref<64x128xf32, #tpu.memory_space<vmem>>, vector<64x128xf32>
    %c0_1 = arith.constant 0 : index
    %c0_2 = arith.constant 0 : index
    %1 = vector.load %arg2[%c0_1, %c0_2] : memref<128x256xf32, #tpu.memory_space<vmem>>, vector<128x256xf32>
    %cst = arith.constant dense<0.000000e+00> : vector<64x256xf32>
    %2 = tpu.matmul %0, %1, %cst {dimension_numbers = #tpu.dot_dimension_numbers<[1], [0], [0], [1], [0, 0, 1, 1], [], []>} : vector<64x128xf32>, vector<128x256xf32>, vector<64x256xf32> -> vector<64x256xf32>
    %c0_3 = arith.constant 0 : index
    %c0_4 = arith.constant 0 : index
    %3 = vector.load %arg3[%c0_3, %c0_4] : memref<1x256xf32, #tpu.memory_space<vmem>>, vector<1x256xf32>
    %4 = vector.broadcast %3 : vector<1x256xf32> to vector<64x256xf32>
    %5 = arith.addf %2, %4 : vector<64x256xf32>
    %6 = vector.extract_strided_slice %5 {offsets = [0, 0], sizes = [64, 128], strides = [1, 1]} : vector<64x256xf32> to vector<64x128xf32>
    %7 = arith.negf %6 : vector<64x128xf32>
    %8 = math.exp %7 : vector<64x128xf32>
    %cst_5 = arith.constant 1.000000e+00 : f32
    %9 = vector.broadcast %cst_5 : f32 to vector<64x128xf32>
    %10 = arith.addf %9, %8 : vector<64x128xf32>
    %11 = arith.divf %9, %10 : vector<64x128xf32>
    %12 = vector.extract_strided_slice %5 {offsets = [0, 128], sizes = [64, 128], strides = [1, 1]} : vector<64x256xf32> to vector<64x128xf32>
    %13 = math.tanh %12 : vector<64x128xf32>
    %cst_6 = arith.constant 1.000000e+00 : f32
    %14 = vector.broadcast %cst_6 : f32 to vector<64x128xf32>
    %15 = arith.subf %14, %11 : vector<64x128xf32>
    %16 = arith.mulf %15, %13 : vector<64x128xf32>
    %cst_7 = arith.constant 0.000000e+00 : f32
    %17 = vector.broadcast %cst_7 : f32 to vector<64x128xf32>
    %18 = arith.maximumf %16, %17 : vector<64x128xf32>
    %c0_8 = arith.constant 0 : index
    %c0_9 = arith.constant 0 : index
    %19 = vector.load %arg4[%c0_8, %c0_9] : memref<64x128xf32, #tpu.memory_space<vmem>>, vector<64x128xf32>
    tpu.vector_store %arg4[%c0_8, %c0_9], %18 {strides = array<i32>} : memref<64x128xf32, #tpu.memory_space<vmem>>, vector<64x128xf32>,
    return
  }
  func.func @transform_0(%arg0: i32) -> (i32, i32) {
    %c0_i32 = arith.constant 0 : i32
    %c0_i32_0 = arith.constant 0 : i32
    return %arg0, %c0_i32 : i32, i32
  }
  func.func @transform_1(%arg0: i32) -> (i32, i32) {
    %c0_i32 = arith.constant 0 : i32
    %c0_i32_0 = arith.constant 0 : i32
    %c0_i32_1 = arith.constant 0 : i32
    return %c0_i32, %c0_i32_0 : i32, i32
  }
  func.func @transform_2(%arg0: i32) -> (i32, i32) {
    %c0_i32 = arith.constant 0 : i32
    %c0_i32_0 = arith.constant 0 : i32
    %c0_i32_1 = arith.constant 0 : i32
    return %c0_i32, %c0_i32_0 : i32, i32
  }
  func.func @transform_3(%arg0: i32) -> (i32, i32) {
    %c0_i32 = arith.constant 0 : i32
    %c0_i32_0 = arith.constant 0 : i32
    return %arg0, %c0_i32 : i32, i32
  }
}

module attributes {stable_mosaic.version = 11 : i64} {
  func.func @gcrn_gru_kernel_h0(%arg0: i32, %arg1: memref<64x128xf32, #tpu.memory_space<vmem>>, %arg2: memref<128x256xf32, #tpu.memory_space<vmem>>, %arg3: memref<1x256xf32, #tpu.memory_space<vmem>>, %arg4: memref<64x128xf32, #tpu.memory_space<vmem>>) attributes {dimension_semantics = [#tpu.dimension_semantics<parallel>], iteration_bounds = array<i64: 1>, scalar_prefetch = 0 : i64, scratch_operands = 0 : i64, tpu.core_type = #tpu.core_type<tc>, window_params = [{transform_indices = @transform_0, window_bounds = array<i64: 64, 128>}, {pipeline_mode = #tpu.pipeline_mode<synchronous>, transform_indices = @transform_1, window_bounds = array<i64: 128, 256>}, {pipeline_mode = #tpu.pipeline_mode<synchronous>, transform_indices = @transform_2, window_bounds = array<i64: 1, 256>}, {transform_indices = @transform_3, window_bounds = array<i64: 64, 128>}]} {
    %c0 = arith.constant 0 : index
    %c0_0 = arith.constant 0 : index
    %0 = vector.load %arg1[%c0, %c0_0] : memref<64x128xf32, #tpu.memory_space<vmem>>, vector<64x128xf32>
    %c0_1 = arith.constant 0 : index
    %c0_2 = arith.constant 0 : index
    %1 = vector.load %arg2[%c0_1, %c0_2] : memref<128x256xf32, #tpu.memory_space<vmem>>, vector<128x256xf32>
    %cst = arith.constant dense<0.000000e+00> : vector<64x256xf32>
    %2 = tpu.matmul %0, %1, %cst {dimension_numbers = #tpu.dot_dimension_numbers<[1], [0], [0], [1], [0, 0, 1, 1], [], []>} : vector<64x128xf32>, vector<128x256xf32>, vector<64x256xf32> -> vector<64x256xf32>
    %c0_3 = arith.constant 0 : index
    %c0_4 = arith.constant 0 : index
    %3 = vector.load %arg3[%c0_3, %c0_4] : memref<1x256xf32, #tpu.memory_space<vmem>>, vector<1x256xf32>
    %4 = vector.broadcast %3 : vector<1x256xf32> to vector<64x256xf32>
    %5 = arith.addf %2, %4 : vector<64x256xf32>
    %6 = vector.extract_strided_slice %5 {offsets = [0, 0], sizes = [64, 128], strides = [1, 1]} : vector<64x256xf32> to vector<64x128xf32>
    %7 = arith.negf %6 : vector<64x128xf32>
    %8 = math.exp %7 : vector<64x128xf32>
    %cst_5 = arith.constant 1.000000e+00 : f32
    %9 = vector.broadcast %cst_5 : f32 to vector<64x128xf32>
    %10 = arith.addf %9, %8 : vector<64x128xf32>
    %11 = arith.divf %9, %10 : vector<64x128xf32>
    %12 = vector.extract_strided_slice %5 {offsets = [0, 128], sizes = [64, 128], strides = [1, 1]} : vector<64x256xf32> to vector<64x128xf32>
    %13 = math.tanh %12 : vector<64x128xf32>
    %cst_6 = arith.constant 1.000000e+00 : f32
    %14 = vector.broadcast %cst_6 : f32 to vector<64x128xf32>
    %15 = arith.subf %14, %11 : vector<64x128xf32>
    %16 = arith.mulf %15, %13 : vector<64x128xf32>
    %cst_7 = arith.constant 0.000000e+00 : f32
    %17 = vector.broadcast %cst_7 : f32 to vector<64x128xf32>
    %18 = arith.maximumf %16, %17 : vector<64x128xf32>
    %c0_8 = arith.constant 0 : index
    %c0_9 = arith.constant 0 : index
    %19 = vector.load %arg4[%c0_8, %c0_9] : memref<64x128xf32, #tpu.memory_space<vmem>>, vector<64x128xf32>
    tpu.vector_store %arg4[%c0_8, %c0_9], %18 {strides = array<i32>} : memref<64x128xf32, #tpu.memory_space<vmem>>, vector<64x128xf32>,
    return
  }
  func.func @transform_0(%arg0: i32) -> (i32, i32) {
    %c0_i32 = arith.constant 0 : i32
    %c0_i32_0 = arith.constant 0 : i32
    return %arg0, %c0_i32 : i32, i32
  }
  func.func @transform_1(%arg0: i32) -> (i32, i32) {
    %c0_i32 = arith.constant 0 : i32
    %c0_i32_0 = arith.constant 0 : i32
    %c0_i32_1 = arith.constant 0 : i32
    return %c0_i32, %c0_i32_0 : i32, i32
  }
  func.func @transform_2(%arg0: i32) -> (i32, i32) {
    %c0_i32 = arith.constant 0 : i32
    %c0_i32_0 = arith.constant 0 : i32
    %c0_i32_1 = arith.constant 0 : i32
    return %c0_i32, %c0_i32_0 : i32, i32
  }
  func.func @transform_3(%arg0: i32) -> (i32, i32) {
    %c0_i32 = arith.constant 0 : i32
    %c0_i32_0 = arith.constant 0 : i32
    return %arg0, %c0_i32 : i32, i32
  }
}

</mosaic_0001>

<bundles_post_ra>
// kernel: tpu_custom_call.1
= control target key start
LH: loop header
LB: loop body
LE: loop exit
PB: predicated region body
PF: predicated region fallthrough
CT: control target
= control target key end

     0   :  { %8 = vsyncpa [#allocation3], 0  ;;  %s774_s0 = inlined_call_operand.hbm [shape: f32[64,128], index: 0, kind: input, shape index: {}]   ;;  %s775_s1 = inlined_call_operand.hbm [shape: f32[128,256], index: 1, kind: input, shape index: {}]   ;;  %s776_s2 = inlined_call_operand.hbm [shape: f32[1,256], index: 2, kind: input, shape index: {}]   ;;  %s777_s3 = inlined_call_operand.hbm [shape: f32[64,128], index: 3, kind: output, shape index: {}]  }
   0x1   :  { %9 = vsyncpa [#allocation6], 0  ;;  %s28_s14 = sshll.u32 %s775_s1, 4  ;;  %s29_s14 = int_to_ptr.hbm [resolvable:$true] %s28_s14 }
   0x2   :  { %10 = vsyncpa [#allocation4], 0  ;;  %s598_s15 = smov [#allocation5]   ;;  %s15_s19 = sshll.u32 %s774_s0, 4  ;;  %s16_s19 = int_to_ptr.hbm [resolvable:$true] %s15_s19 }
   0x3   :  { %s30_s16 = sshll.u32 %s598_s15, 4  ;;  %s599_s20 = smov 256   ;;  %s31_s16 = int_to_ptr.vmem [resolvable:$true] %s30_s16 }
   0x4   :  { %s600_s21 = smov 16   ;;  %s601_s22 = smov [#allocation2]  }
   0x5   :  { %36 = dma.hbm_to_vmem [thread:$0]  %s29_s14, 4096, %s31_s16, [#allocation6], %s599_s20, %s599_s20, %s600_s21  }
   0x6   :  { %s17_s23 = sshll.u32 %s601_s22, 4  ;;  %s602_s24 = smov 128   ;;  %s18_s23 = int_to_ptr.vmem [resolvable:$true] %s17_s23 }
   0x7   :  { %s603_s25 = smov 8   ;;  %s42_s27 = sshll.u32 %s776_s2, 4  ;;  %s43_s27 = int_to_ptr.hbm [resolvable:$true] %s42_s27 }
   0x8   :  { %23 = dma.hbm_to_vmem [thread:$0]  %s16_s19, 1024, %s18_s23, [#allocation3], %s602_s24, %s602_s24, %s603_s25  }
   0x9   :  { %s604_s28 = smov [#allocation7]  }
   0xa   :  { %s44_s0 = sshll.u32 %s604_s28, 4  ;;  %s45_s0 = int_to_ptr.vmem [resolvable:$true] %s44_s0 }
   0xb   :  { %47 = dma.hbm_to_vmem [thread:$0]  %s43_s27, 32, %s45_s0, [#allocation6]  }
   0xc   :  { %592 = dma.done.wait [#allocation3], 1024  }
   0xd   :  { %593 = vsyncadd [#allocation3], 4294966272 }
   0xe   :  { %594 = dma.done.wait [#allocation6], 4128  }
   0xf   :  { %595 = vsyncadd [#allocation6], 4294963168  ;;  %v98_v0 = vld [vmem:[#allocation5 + $0xf0] sm:$0xff]  ;;  %v96_v1 = vld [vmem:[#allocation5 + $0xe0] sm:$0xff]  ;;  %s605_s2 = smov [#allocation8]   ;;  %s386_s5 = sshll.u32 %s777_s3, 4  ;;  %s387_s5 = int_to_ptr.hbm [resolvable:$true] %s386_s5 }
  0x10   :  { %106 = vmatpush.msra.mxu0 %v98_v0  ;;  %408 = vmatpush.msra.mxu2 %v98_v0  ;;  %v94_v2 = vld [vmem:[#allocation5 + $0xd0] sm:$0xff]  ;;  %v92_v3 = vld [vmem:[#allocation5 + $0xc0] sm:$0xff]  ;;  %v99_v4 = vld [vmem:[#allocation5 + $0xf8] sm:$0xff]  ;;  %s384_s29 = sshll.u32 %s605_s2, 4  ;;  %s385_s29 = int_to_ptr.vmem [resolvable:$true] %s384_s29 }
  0x11   :  { %v97_v5 = vld [vmem:[#allocation5 + $0xe8] sm:$0xff]  ;;  %v90_v6 = vld [vmem:[#allocation5 + $0xb0] sm:$0xff]  ;;  %147 = vmatpush.msra.mxu1 %v99_v4  ;;  %424 = vmatpush.msra.mxu3 %v99_v4  ;;  %v95_v7 = vld [vmem:[#allocation5 + $0xd8] sm:$0xff] }
  0x12   :  { %107 = vmatpush.msra.mxu0 %v96_v1  ;;  %409 = vmatpush.msra.mxu2 %v96_v1  ;;  %v88_v8 = vld [vmem:[#allocation5 + $0xa0] sm:$0xff]  ;;  %v93_v9 = vld [vmem:[#allocation5 + $0xc8] sm:$0xff]  ;;  %v86_v10 = vld [vmem:[#allocation5 + $0x90] sm:$0xff] }
  0x13   :  { %148 = vmatpush.msra.mxu1 %v97_v5  ;;  %425 = vmatpush.msra.mxu3 %v97_v5  ;;  %v91_v11 = vld [vmem:[#allocation5 + $0xb8] sm:$0xff]  ;;  %v84_v12 = vld [vmem:[#allocation5 + $0x80] sm:$0xff]  ;;  %v89_v13 = vld [vmem:[#allocation5 + $0xa8] sm:$0xff] }
  0x14   :  { %108 = vmatpush.msra.mxu0 %v94_v2  ;;  %410 = vmatpush.msra.mxu2 %v94_v2  ;;  %v82_v14 = vld [vmem:[#allocation5 + $0x70] sm:$0xff]  ;;  %v87_v15 = vld [vmem:[#allocation5 + $0x98] sm:$0xff]  ;;  %v80_v16 = vld [vmem:[#allocation5 + $0x60] sm:$0xff] }
  0x15   :  { %149 = vmatpush.msra.mxu1 %v95_v7  ;;  %426 = vmatpush.msra.mxu3 %v95_v7  ;;  %v85_v17 = vld [vmem:[#allocation5 + $0x88] sm:$0xff]  ;;  %v78_v18 = vld [vmem:[#allocation5 + $0x50] sm:$0xff]  ;;  %v83_v19 = vld [vmem:[#allocation5 + $0x78] sm:$0xff] }
  0x16   :  { %109 = vmatpush.msra.mxu0 %v92_v3  ;;  %411 = vmatpush.msra.mxu2 %v92_v3  ;;  %v76_v20 = vld [vmem:[#allocation5 + $0x40] sm:$0xff]  ;;  %v81_v21 = vld [vmem:[#allocation5 + $0x68] sm:$0xff]  ;;  %v74_v22 = vld [vmem:[#allocation5 + $0x30] sm:$0xff] }
  0x17   :  { %150 = vmatpush.msra.mxu1 %v93_v9  ;;  %427 = vmatpush.msra.mxu3 %v93_v9  ;;  %v79_v23 = vld [vmem:[#allocation5 + $0x58] sm:$0xff]  ;;  %v72_v24 = vld [vmem:[#allocation5 + $0x20] sm:$0xff]  ;;  %v77_v25 = vld [vmem:[#allocation5 + $0x48] sm:$0xff] }
  0x18   :  { %110 = vmatpush.msra.mxu0 %v90_v6  ;;  %412 = vmatpush.msra.mxu2 %v90_v6  ;;  %v70_v26 = vld [vmem:[#allocation5 + $0x10] sm:$0xff]  ;;  %v75_v27 = vld [vmem:[#allocation5 + $0x38] sm:$0xff]  ;;  %v68_v28 = vld [vmem:[#allocation5] sm:$0xff] }
  0x19   :  { %151 = vmatpush.msra.mxu1 %v91_v11  ;;  %428 = vmatpush.msra.mxu3 %v91_v11  ;;  %v60_v29 = vld [vmem:[#allocation2] sm:$0xff]  ;;  %v73_v31 = vld [vmem:[#allocation5 + $0x28] sm:$0xff]  ;;  %v71_v32 = vld [vmem:[#allocation5 + $0x18] sm:$0xff] }
  0x1a   :  { %111 = vmatpush.msra.mxu0 %v88_v8  ;;  %413 = vmatpush.msra.mxu2 %v88_v8  ;;  %v64_v30 = vld [vmem:[#allocation2 + $0x20] sm:$0xff]  ;;  %v69_v33 = vld [vmem:[#allocation5 + $0x8] sm:$0xff]  ;;  %v62_v36 = vld [vmem:[#allocation2 + $0x10] sm:$0xff] }
  0x1b   :  { %152 = vmatpush.msra.mxu1 %v89_v13  ;;  %429 = vmatpush.msra.mxu3 %v89_v13  ;;  %v61_v34 = vld [vmem:[#allocation2 + $0x8] sm:$0xff]  ;;  %v66_v37 = vld [vmem:[#allocation2 + $0x30] sm:$0xff]  ;;  %v63_v38 = vld [vmem:[#allocation2 + $0x18] sm:$0xff] }
  0x1c   :  { %112 = vmatpush.msra.mxu0 %v86_v10  ;;  %414 = vmatpush.msra.mxu2 %v86_v10  ;;  %v65_v35 = vld [vmem:[#allocation2 + $0x28] sm:$0xff]  ;;  %v67_v39 = vld [vmem:[#allocation2 + $0x38] sm:$0xff]  ;;  %v100_v40 = vld [vmem:[#allocation7] sm:$0x3] }
  0x1d   :  { %153 = vmatpush.msra.mxu1 %v87_v15  ;;  %430 = vmatpush.msra.mxu3 %v87_v15  ;;  %v638_v41 = vperm.slane %v100_v40, 0  ;;  %v643_v51 = vperm.slane %v100_v40, 1 }
  0x1e   :  { %113 = vmatpush.msra.mxu0 %v84_v12  ;;  %415 = vmatpush.msra.mxu2 %v84_v12 }
  0x1f   :  { %154 = vmatpush.msra.mxu1 %v85_v17  ;;  %431 = vmatpush.msra.mxu3 %v85_v17 }
  0x20   :  { %114 = vmatpush.msra.mxu0 %v82_v14  ;;  %416 = vmatpush.msra.mxu2 %v82_v14 }
  0x21   :  { %155 = vmatpush.msra.mxu1 %v83_v19  ;;  %432 = vmatpush.msra.mxu3 %v83_v19 }
  0x22   :  { %115 = vmatpush.msra.mxu0 %v80_v16  ;;  %417 = vmatpush.msra.mxu2 %v80_v16 }
  0x23   :  { %156 = vmatpush.msra.mxu1 %v81_v21  ;;  %433 = vmatpush.msra.mxu3 %v81_v21 }
  0x24   :  { %116 = vmatpush.msra.mxu0 %v78_v18  ;;  %418 = vmatpush.msra.mxu2 %v78_v18 }
  0x25   :  { %157 = vmatpush.msra.mxu1 %v79_v23  ;;  %434 = vmatpush.msra.mxu3 %v79_v23 }
  0x26   :  { %117 = vmatpush.msra.mxu0 %v76_v20  ;;  %419 = vmatpush.msra.mxu2 %v76_v20 }
  0x27   :  { %158 = vmatpush.msra.mxu1 %v77_v25  ;;  %435 = vmatpush.msra.mxu3 %v77_v25 }
  0x28   :  { %118 = vmatpush.msra.mxu0 %v74_v22  ;;  %420 = vmatpush.msra.mxu2 %v74_v22 }
  0x29   :  { %159 = vmatpush.msra.mxu1 %v75_v27  ;;  %436 = vmatpush.msra.mxu3 %v75_v27 }
  0x2a   :  { %119 = vmatpush.msra.mxu0 %v72_v24  ;;  %421 = vmatpush.msra.mxu2 %v72_v24 }
  0x2b   :  { %160 = vmatpush.msra.mxu1 %v73_v31  ;;  %437 = vmatpush.msra.mxu3 %v73_v31 }
  0x2c   :  { %120 = vmatpush.msra.mxu0 %v70_v26  ;;  %422 = vmatpush.msra.mxu2 %v70_v26 }
  0x2d   :  { %161 = vmatpush.msra.mxu1 %v71_v32  ;;  %438 = vmatpush.msra.mxu3 %v71_v32 }
  0x2e   :  { %121 = vmatpush.msra.mxu0 %v68_v28  ;;  %423 = vmatpush.msra.mxu2 %v68_v28 }
  0x2f   :  { %122 = vmatmul.f32.vlgmr.msra.gmra.mxu0 %v60_v29  ;;  %134 = vmatmul.f32.vlgmr.msra.gmra.mxu2 %v64_v30 }
  0x30   :  { %162 = vmatpush.msra.mxu1 %v69_v33  ;;  %439 = vmatpush.msra.mxu3 %v69_v33 }
  0x31   :  { %163 = vmatmul.f32.vlgmr.msra.gmra.mxu1 %v60_v29  ;;  %175 = vmatmul.f32.vlgmr.msra.gmra.mxu3 %v64_v30 }
  0x37   :  { %125 = vmatmul.f32.gmra.mxu0 %v61_v34  ;;  %137 = vmatmul.f32.gmra.mxu2 %v65_v35 }
  0x39   :  { %166 = vmatmul.f32.gmra.mxu1 %v61_v34  ;;  %178 = vmatmul.f32.gmra.mxu3 %v65_v35 }
  0x3f   :  { %128 = vmatmul.f32.gmra.mxu0 %v62_v36  ;;  %140 = vmatmul.f32.gmra.mxu2 %v66_v37 }
  0x41   :  { %169 = vmatmul.f32.gmra.mxu1 %v62_v36  ;;  %181 = vmatmul.f32.gmra.mxu3 %v66_v37 }
  0x47   :  { %131 = vmatmul.f32.gmra.mxu0 %v63_v38  ;;  %143 = vmatmul.f32.gmra.mxu2 %v67_v39 }
  0x49   :  { %172 = vmatmul.f32.gmra.mxu1 %v63_v38  ;;  %184 = vmatmul.f32.gmra.mxu3 %v67_v39 }
  0xac   :  { %v123_v42 = vpop.f32.mrf.mxu0 }
  0xad   :  { %v124_v43 = vadd.f32 %v123_v42, %v638_v41 }
  0xae   :  { %v164_v46 = vpop.f32.mrf.mxu1 }
  0xaf   :  { %v400_v44 = vmul.f32 -1.442695, %v124_v43  ;;  %v165_v56 = vadd.f32 %v164_v46, %v643_v51 }
  0xb1   :  { %448 = vpow2.f32 %v400_v44 }
  0xb2   :  { %v135_v45 = vpop.f32.mrf.mxu2 }
  0xb3   :  { %v136_v47 = vadd.f32 %v135_v45, %v638_v41 }
  0xb4   :  { %v126_v48 = vpop.f32.mrf.mxu0  ;;  %v176_v58 = vpop.f32.mrf.mxu3 }
  0xb5   :  { %v404_v49 = vmul.f32 -1.442695, %v136_v47  ;;  %v127_v50 = vadd.f32 %v126_v48, %v638_v41  ;;  %v177_v4 = vadd.f32 %v176_v58, %v643_v51 }
  0xb6   :  { %v167_v59 = vpop.f32.mrf.mxu1 }
  0xb7   :  { %v449_v52 = vpop.eup %448  ;;  %450 = vpow2.f32 %v404_v49  ;;  %v401_v53 = vmul.f32 -1.442695, %v127_v50  ;;  %v168_v8 = vadd.f32 %v167_v59, %v643_v51 }
  0xb8   :  { %v212_v54 = vadd.f32 1.0, %v449_v52 }
  0xb9   :  { %452 = vpow2.f32 %v401_v53 }
  0xba   :  { %454 = vrcp.f32 %v212_v54  ;;  %v138_v55 = vpop.f32.mrf.mxu2  ;;  %v229_v3 = vand.u32 2147483647, %v212_v54  ;;  %v231_v7 = vand.u32 2147483648, %v212_v54  ;;  %vm225_vm0 = vweird.f32 %v212_v54 }
  0xbb   :  { %v139_v57 = vadd.f32 %v138_v55, %v638_v41  ;;  %456 = vtanh.f32 %v165_v56 }
  0xbc   :  { %v129_v60 = vpop.f32.mrf.mxu0  ;;  %vm659_vm1 = vcmp.eq.f32.partialorder %v229_v3, 8.507059e+37  ;;  %v232_v17 = vor.u32 1.1754944e-38, %v231_v7  ;;  %v179_v23 = vpop.f32.mrf.mxu3 }
  0xbd   :  { %v451_v61 = vpop.eup %450  ;;  %v405_v62 = vmul.f32 -1.442695, %v139_v57  ;;  %v130_v63 = vadd.f32 %v129_v60, %v638_v41  ;;  %v180_v37 = vadd.f32 %v179_v23, %v643_v51 }
  0xbe   :  { %v648_v0 = vadd.f32 1.0, %v451_v61  ;;  %v170_v24 = vpop.f32.mrf.mxu1 }
  0xbf   :  { %v453_v1 = vpop.eup %452  ;;  %458 = vpow2.f32 %v405_v62  ;;  %v402_v2 = vmul.f32 -1.442695, %v130_v63  ;;  %v171_v38 = vadd.f32 %v170_v24, %v643_v51 }
  0xc0   :  { %v455_v5 = vpop.eup %454  ;;  %460 = vrcp.f32 %v648_v0  ;;  %v652_v6 = vadd.f32 1.0, %v453_v1  ;;  %v291_v11 = vand.u32 2147483648, %v648_v0  ;;  %v289_v14 = vand.u32 2147483647, %v648_v0 }
  0xc1   :  { %v221_v9 = vmul.f32 %v455_v5, %v212_v54  ;;  %462 = vpow2.f32 %v402_v2  ;;  %v457_v15 = vpop.eup %456  ;;  %vm226_vm2 = vweird.f32 %v455_v5  ;;  %vm285_vm3 = vweird.f32 %v648_v0 }
  0xc2   :  { %464 = vrcp.f32 %v652_v6  ;;  %v141_v10 = vpop.f32.mrf.mxu2  ;;  %v292_v27 = vor.u32 1.1754944e-38, %v291_v11  ;;  %vm240_vm4 = vweird.f32 %v652_v6  ;;  %v244_v28 = vand.u32 2147483647, %v652_v6  ;;  %vm227_vm6 = vmor %vm225_vm0, %vm226_vm2 }
  0xc3   :  { %v222_v12 = vsub.f32 1.0, %v221_v9  ;;  %v142_v13 = vadd.f32 %v141_v10, %v638_v41  ;;  %466 = vtanh.f32 %v177_v4  ;;  %v246_v29 = vand.u32 2147483648, %v652_v6 }
  0xc4   :  { %v132_v18 = vpop.f32.mrf.mxu0  ;;  %468 = vtanh.f32 %v168_v8  ;;  %vm671_vm5 = vcmp.eq.f32.partialorder %v289_v14, 8.507059e+37  ;;  %vm691_vm8 = vcmp.eq.f32.partialorder %v244_v28, 8.507059e+37  ;;  %v182_v14 = vpop.f32.mrf.mxu3 }
  0xc5   :  { %v459_v19 = vpop.eup %458  ;;  %v223_v20 = vmul.f32 %v455_v5, %v222_v12  ;;  %v406_v21 = vmul.f32 -1.442695, %v142_v13  ;;  %v133_v22 = vadd.f32 %v132_v18, %v638_v41  ;;  %v247_v54 = vor.u32 1.1754944e-38, %v246_v29 }
  0xc6   :  { %v461_v25 = vpop.eup %460  ;;  %v665_v26 = vadd.f32 1.0, %v459_v19 }
  0xc7   :  { %v463_v30 = vpop.eup %462  ;;  %v281_v31 = vmul.f32 %v461_v25, %v648_v0  ;;  %470 = vpow2.f32 %v406_v21  ;;  %v224_v32 = vadd.f32 %v455_v5, %v223_v20  ;;  %v403_v33 = vmul.f32 -1.442695, %v133_v22 }
  0xc8   :  { %v675_v35 = vpop.eup %464  ;;  %472 = vrcp.f32 %v665_v26  ;;  %v678_v36 = vadd.f32 1.0, %v463_v30  ;;  %vm286_vm7 = vweird.f32 %v461_v25  ;;  %v304_v48 = vand.u32 2147483647, %v665_v26 }
  0xc9   :  { %v467_v39 = vpop.eup %466  ;;  %v282_v40 = vsub.f32 1.0, %v281_v31  ;;  %v236_v42 = vmul.f32 %v675_v35, %v652_v6  ;;  %v228_v43 = vsel %vm227_vm6, %v455_v5, %v224_v32  ;;  %474 = vpow2.f32 %v403_v33  ;;  %vm287_vm11 = vmor %vm285_vm3, %vm286_vm7 }
  0xca   :  { %v686_v44 = vpop.eup %468  ;;  %476 = vrcp.f32 %v678_v36  ;;  %v233_v45 = vsel %vm659_vm1, %v232_v17, %v228_v43  ;;  %v144_v46 = vpop.f32.mrf.mxu2  ;;  %vm241_vm9 = vweird.f32 %v675_v35  ;;  %v306_v55 = vand.u32 2147483648, %v665_v26 }
  0xcb   :  { %v283_v49 = vmul.f32 %v461_v25, %v282_v40  ;;  %v237_v50 = vsub.f32 1.0, %v236_v42  ;;  %v348_v52 = vsub.f32 1.0, %v233_v45  ;;  %v145_v53 = vadd.f32 %v144_v46, %v638_v41  ;;  %vm242_vm14 = vmor %vm240_vm4, %vm241_vm9 }
  0xcc   :  { %478 = vtanh.f32 %v180_v37  ;;  %vm300_vm10 = vweird.f32 %v665_v26  ;;  %v307_v41 = vor.u32 1.1754944e-38, %v306_v55  ;;  %vm255_vm12 = vweird.f32 %v678_v36  ;;  %v173_v37 = vpop.f32.mrf.mxu1 }
  0xcd   :  { %v471_v56 = vpop.eup %470  ;;  %v238_v57 = vmul.f32 %v675_v35, %v237_v50  ;;  %v356_v58 = vmul.f32 %v457_v15, %v348_v52  ;;  %v284_v59 = vadd.f32 %v461_v25, %v283_v49  ;;  %v407_v60 = vmul.f32 -1.442695, %v145_v53  ;;  %v185_v53 = vpop.f32.mrf.mxu3 }
  0xce   :  { %v473_v61 = vpop.eup %472  ;;  %v701_v62 = vadd.f32 1.0, %v471_v56  ;;  %v259_v63 = vand.u32 2147483647, %v678_v36  ;;  %vm709_vm13 = vcmp.eq.f32.partialorder %v304_v48, 8.507059e+37  ;;  %v261_v13 = vand.u32 2147483648, %v678_v36 }
  0xcf   :  { %v475_v1 = vpop.eup %474  ;;  %v296_v2 = vmul.f32 %v473_v61, %v665_v26  ;;  %v364_v3 = vmax.f32 %v356_v58, 0.0  ;;  %v288_v4 = vsel %vm287_vm11, %v461_v25, %v284_v59  ;;  %480 = vpow2.f32 %v407_v60 }
  0xd0   :  { %v477_v7 = vpop.eup %476  ;;  %482 = vrcp.f32 %v701_v62  ;;  %v714_v0 = vadd.f32 1.0, %v475_v1  ;;  %v293_v8 = vsel %vm671_vm5, %v292_v27, %v288_v4  ;;  %v239_v9 = vadd.f32 %v675_v35, %v238_v57 }
  0xd1   :  { %v297_v10 = vsub.f32 1.0, %v296_v2  ;;  %v251_v11 = vmul.f32 %v477_v7, %v678_v36  ;;  %372 = vst [vmem:[#allocation8] sm:$0xff] %v364_v3  ;;  %v352_v12 = vsub.f32 1.0, %v293_v8  ;;  %vm301_vm15 = vweird.f32 %v473_v61 }
  0xd2   :  { %v479_v15 = vpop.eup %478  ;;  %484 = vrcp.f32 %v714_v0  ;;  %v243_v16 = vsel %vm242_vm14, %v675_v35, %v239_v9  ;;  %vm727_vm0 = vcmp.eq.f32.partialorder %v259_v63, 8.507059e+37  ;;  %vm256_vm1 = vweird.f32 %v477_v7  ;;  %vm302_vm2 = vmor %vm300_vm10, %vm301_vm15 }
  0xd3   :  { %v298_v18 = vmul.f32 %v473_v61, %v297_v10  ;;  %v252_v19 = vsub.f32 1.0, %v251_v11  ;;  %v360_v20 = vmul.f32 %v467_v39, %v352_v12  ;;  %v248_v6 = vsel %vm691_vm8, %v247_v54, %v243_v16  ;;  %vm257_vm4 = vmor %vm255_vm12, %vm256_vm1 }
  0xd4   :  { %v349_v21 = vsub.f32 1.0, %v248_v6  ;;  %486 = vtanh.f32 %v171_v38  ;;  %v183_v22 = vadd.f32 %v182_v14, %v643_v51  ;;  %v262_v28 = vor.u32 1.1754944e-38, %v261_v13 }
  0xd5   :  { %v481_v23 = vpop.eup %480  ;;  %v253_v24 = vmul.f32 %v477_v7, %v252_v19  ;;  %v368_v25 = vmax.f32 %v360_v20, 0.0  ;;  %v299_v27 = vadd.f32 %v473_v61, %v298_v18  ;;  %vm315_vm3 = vweird.f32 %v701_v62 }
  0xd6   :  { %v483_v29 = vpop.eup %482  ;;  %v734_v30 = vadd.f32 1.0, %v481_v23  ;;  %v357_v31 = vmul.f32 %v686_v44, %v349_v21  ;;  %v319_v32 = vand.u32 2147483647, %v701_v62  ;;  %488 = vtanh.f32 %v183_v22 }
  0xd7   :  { %v311_v33 = vmul.f32 %v483_v29, %v701_v62  ;;  %376 = vst [vmem:[#allocation8 + $0x20] sm:$0xff] %v368_v25  ;;  %v303_v34 = vsel %vm302_vm2, %v473_v61, %v299_v27  ;;  %v254_v35 = vadd.f32 %v477_v7, %v253_v24  ;;  %v321_v26 = vand.u32 2147483648, %v701_v62 }
  0xd8   :  { %v485_v38 = vpop.eup %484  ;;  %490 = vrcp.f32 %v734_v30  ;;  %v365_v39 = vmax.f32 %v357_v31, 0.0  ;;  %v308_v40 = vsel %vm709_vm13, %v307_v41, %v303_v34  ;;  %vm316_vm5 = vweird.f32 %v483_v29 }
  0xd9   :  { %v312_v42 = vsub.f32 1.0, %v311_v33  ;;  %v266_v43 = vmul.f32 %v485_v38, %v714_v0  ;;  %v353_v44 = vsub.f32 1.0, %v308_v40  ;;  %v258_v45 = vsel %vm257_vm4, %v477_v7, %v254_v35  ;;  %vm317_vm8 = vmor %vm315_vm3, %vm316_vm5 }
  0xda   :  { %v487_v46 = vpop.eup %486  ;;  %373 = vst [vmem:[#allocation8 + $0x8] sm:$0xff] %v365_v39  ;;  %v263_v47 = vsel %vm727_vm0, %v262_v28, %v258_v45  ;;  %v174_v48 = vadd.f32 %v173_v37, %v643_v51  ;;  %vm270_vm6 = vweird.f32 %v714_v0  ;;  %vm271_vm7 = vweird.f32 %v485_v38 }
  0xdb   :  { %v313_v49 = vmul.f32 %v483_v29, %v312_v42  ;;  %v267_v36 = vsub.f32 1.0, %v266_v43  ;;  %v361_v50 = vmul.f32 %v479_v15, %v353_v44  ;;  %v350_v52 = vsub.f32 1.0, %v263_v47  ;;  %vm272_vm10 = vmor %vm270_vm6, %vm271_vm7 }
  0xdc   :  { %v274_v54 = vand.u32 2147483647, %v714_v0  ;;  %v276_v55 = vand.u32 2147483648, %v714_v0  ;;  %492 = vtanh.f32 %v174_v48  ;;  %v489_v56 = vpop.eup %488  ;;  %vm320_vm9 = vcmp.eq.f32.partialorder %v319_v32, 8.507059e+37 }
  0xdd   :  { %v268_v57 = vmul.f32 %v485_v38, %v267_v36  ;;  %v369_v58 = vmax.f32 %v361_v50, 0.0  ;;  %v358_v59 = vmul.f32 %v487_v46, %v350_v52  ;;  %v314_v60 = vadd.f32 %v483_v29, %v313_v49 }
  0xde   :  { %v491_v61 = vpop.eup %490  ;;  %v322_v41 = vor.u32 1.1754944e-38, %v321_v26  ;;  %v186_v63 = vadd.f32 %v185_v53, %v643_v51  ;;  %v277_v7 = vor.u32 1.1754944e-38, %v276_v55  ;;  %vm275_vm11 = vcmp.eq.f32.partialorder %v274_v54, 8.507059e+37 }
  0xdf   :  { %v326_v1 = vmul.f32 %v491_v61, %v734_v30  ;;  %377 = vst [vmem:[#allocation8 + $0x28] sm:$0xff] %v369_v58  ;;  %v366_v2 = vmax.f32 %v358_v59, 0.0  ;;  %v318_v3 = vsel %vm317_vm8, %v483_v29, %v314_v60  ;;  %v269_v4 = vadd.f32 %v485_v38, %v268_v57 }
  0xe0   :  { %v323_v5 = vsel %vm320_vm9, %v322_v41, %v318_v3  ;;  %vm331_vm12 = vweird.f32 %v491_v61  ;;  %v336_v51 = vand.u32 2147483648, %v734_v30  ;;  %494 = vtanh.f32 %v186_v63 }
  0xe1   :  { %v327_v8 = vsub.f32 1.0, %v326_v1  ;;  %374 = vst [vmem:[#allocation8 + $0x10] sm:$0xff] %v366_v2  ;;  %v354_v62 = vsub.f32 1.0, %v323_v5  ;;  %v273_v9 = vsel %vm272_vm10, %v485_v38, %v269_v4  ;;  %v334_v15 = vand.u32 2147483647, %v734_v30 }
  0xe2   :  { %v493_v10 = vpop.eup %492  ;;  %v278_v11 = vsel %vm275_vm11, %v277_v7, %v273_v9  ;;  %vm330_vm13 = vweird.f32 %v734_v30  ;;  %v337_v18 = vor.u32 1.1754944e-38, %v336_v51 }
  0xe3   :  { %v328_v12 = vmul.f32 %v491_v61, %v327_v8  ;;  %v362_v13 = vmul.f32 %v489_v56, %v354_v62  ;;  %v351_v14 = vsub.f32 1.0, %v278_v11  ;;  %vm332_vm14 = vmor %vm330_vm13, %vm331_vm12  ;;  %vm335_vm15 = vcmp.eq.f32.partialorder %v334_v15, 8.507059e+37 }
  0xe5   :  { %v370_v16 = vmax.f32 %v362_v13, 0.0  ;;  %v359_v0 = vmul.f32 %v493_v10, %v351_v14  ;;  %v329_v17 = vadd.f32 %v491_v61, %v328_v12 }
  0xe6   :  { %v495_v6 = vpop.eup %494 }
  0xe7   :  { %378 = vst [vmem:[#allocation8 + $0x30] sm:$0xff] %v370_v16  ;;  %v367_v19 = vmax.f32 %v359_v0, 0.0  ;;  %v333_v20 = vsel %vm332_vm14, %v491_v61, %v329_v17 }
  0xe8   :  { %v338_v21 = vsel %vm335_vm15, %v337_v18, %v333_v20 }
  0xe9   :  { %375 = vst [vmem:[#allocation8 + $0x18] sm:$0xff] %v367_v19  ;;  %v355_v22 = vsub.f32 1.0, %v338_v21 }
  0xeb   :  { %v363_v23 = vmul.f32 %v495_v6, %v355_v22 }
  0xed   :  { %v371_v24 = vmax.f32 %v363_v23, 0.0 }
  0xef   :  { %379 = vst [vmem:[#allocation8 + $0x38] sm:$0xff] %v371_v24 }
  0xf0   :  { %392 = dma.vmem_to_hbm [thread:$0]  %s385_s29, 1024, %s387_s5, [#allocation4], %s602_s24, %s602_s24, %s603_s25  }
  0xf1   :  { %596 = dma.done.wait [#allocation4], 1024  }
  0xf2   :  { %597 = vsyncadd [#allocation4], 4294966272 }
  0xf3   :  { %397 = vsyncpa [#allocation3], 1 }
  0xf4   :  { %398 = vsyncpa [#allocation6], 1 }
  0xf5   :  { %399 = vsyncpa [#allocation4], 1 }

// kernel: tpu_custom_call.1
= control target key start
LH: loop header
LB: loop body
LE: loop exit
PB: predicated region body
PF: predicated region fallthrough
CT: control target
= control target key end

     0   :  { %8 = vsyncpa [#allocation3], 0  ;;  %s774_s0 = inlined_call_operand.hbm [shape: f32[64,128], index: 0, kind: input, shape index: {}]   ;;  %s775_s1 = inlined_call_operand.hbm [shape: f32[128,256], index: 1, kind: input, shape index: {}]   ;;  %s776_s2 = inlined_call_operand.hbm [shape: f32[1,256], index: 2, kind: input, shape index: {}]   ;;  %s777_s3 = inlined_call_operand.hbm [shape: f32[64,128], index: 3, kind: output, shape index: {}]  }
   0x1   :  { %9 = vsyncpa [#allocation6], 0  ;;  %s28_s14 = sshll.u32 %s775_s1, 4  ;;  %s29_s14 = int_to_ptr.hbm [resolvable:$true] %s28_s14 }
   0x2   :  { %10 = vsyncpa [#allocation4], 0  ;;  %s598_s15 = smov [#allocation5]   ;;  %s15_s19 = sshll.u32 %s774_s0, 4  ;;  %s16_s19 = int_to_ptr.hbm [resolvable:$true] %s15_s19 }
   0x3   :  { %s30_s16 = sshll.u32 %s598_s15, 4  ;;  %s599_s20 = smov 256   ;;  %s31_s16 = int_to_ptr.vmem [resolvable:$true] %s30_s16 }
   0x4   :  { %s600_s21 = smov 16   ;;  %s601_s22 = smov [#allocation2]  }
   0x5   :  { %36 = dma.hbm_to_vmem [thread:$0]  %s29_s14, 4096, %s31_s16, [#allocation6], %s599_s20, %s599_s20, %s600_s21  }
   0x6   :  { %s17_s23 = sshll.u32 %s601_s22, 4  ;;  %s602_s24 = smov 128   ;;  %s18_s23 = int_to_ptr.vmem [resolvable:$true] %s17_s23 }
   0x7   :  { %s603_s25 = smov 8   ;;  %s42_s27 = sshll.u32 %s776_s2, 4  ;;  %s43_s27 = int_to_ptr.hbm [resolvable:$true] %s42_s27 }
   0x8   :  { %23 = dma.hbm_to_vmem [thread:$0]  %s16_s19, 1024, %s18_s23, [#allocation3], %s602_s24, %s602_s24, %s603_s25  }
   0x9   :  { %s604_s28 = smov [#allocation7]  }
   0xa   :  { %s44_s0 = sshll.u32 %s604_s28, 4  ;;  %s45_s0 = int_to_ptr.vmem [resolvable:$true] %s44_s0 }
   0xb   :  { %47 = dma.hbm_to_vmem [thread:$0]  %s43_s27, 32, %s45_s0, [#allocation6]  }
   0xc   :  { %592 = dma.done.wait [#allocation3], 1024  }
   0xd   :  { %593 = vsyncadd [#allocation3], 4294966272 }
   0xe   :  { %594 = dma.done.wait [#allocation6], 4128  }
   0xf   :  { %595 = vsyncadd [#allocation6], 4294963168  ;;  %v98_v0 = vld [vmem:[#allocation5 + $0xf0] sm:$0xff]  ;;  %v96_v1 = vld [vmem:[#allocation5 + $0xe0] sm:$0xff]  ;;  %s605_s2 = smov [#allocation8]   ;;  %s386_s5 = sshll.u32 %s777_s3, 4  ;;  %s387_s5 = int_to_ptr.hbm [resolvable:$true] %s386_s5 }
  0x10   :  { %106 = vmatpush.msra.mxu0 %v98_v0  ;;  %408 = vmatpush.msra.mxu2 %v98_v0  ;;  %v94_v2 = vld [vmem:[#allocation5 + $0xd0] sm:$0xff]  ;;  %v92_v3 = vld [vmem:[#allocation5 + $0xc0] sm:$0xff]  ;;  %v99_v4 = vld [vmem:[#allocation5 + $0xf8] sm:$0xff]  ;;  %s384_s29 = sshll.u32 %s605_s2, 4  ;;  %s385_s29 = int_to_ptr.vmem [resolvable:$true] %s384_s29 }
  0x11   :  { %v97_v5 = vld [vmem:[#allocation5 + $0xe8] sm:$0xff]  ;;  %v90_v6 = vld [vmem:[#allocation5 + $0xb0] sm:$0xff]  ;;  %147 = vmatpush.msra.mxu1 %v99_v4  ;;  %424 = vmatpush.msra.mxu3 %v99_v4  ;;  %v95_v7 = vld [vmem:[#allocation5 + $0xd8] sm:$0xff] }
  0x12   :  { %107 = vmatpush.msra.mxu0 %v96_v1  ;;  %409 = vmatpush.msra.mxu2 %v96_v1  ;;  %v88_v8 = vld [vmem:[#allocation5 + $0xa0] sm:$0xff]  ;;  %v93_v9 = vld [vmem:[#allocation5 + $0xc8] sm:$0xff]  ;;  %v86_v10 = vld [vmem:[#allocation5 + $0x90] sm:$0xff] }
  0x13   :  { %148 = vmatpush.msra.mxu1 %v97_v5  ;;  %425 = vmatpush.msra.mxu3 %v97_v5  ;;  %v91_v11 = vld [vmem:[#allocation5 + $0xb8] sm:$0xff]  ;;  %v84_v12 = vld [vmem:[#allocation5 + $0x80] sm:$0xff]  ;;  %v89_v13 = vld [vmem:[#allocation5 + $0xa8] sm:$0xff] }
  0x14   :  { %108 = vmatpush.msra.mxu0 %v94_v2  ;;  %410 = vmatpush.msra.mxu2 %v94_v2  ;;  %v82_v14 = vld [vmem:[#allocation5 + $0x70] sm:$0xff]  ;;  %v87_v15 = vld [vmem:[#allocation5 + $0x98] sm:$0xff]  ;;  %v80_v16 = vld [vmem:[#allocation5 + $0x60] sm:$0xff] }
  0x15   :  { %149 = vmatpush.msra.mxu1 %v95_v7  ;;  %426 = vmatpush.msra.mxu3 %v95_v7  ;;  %v85_v17 = vld [vmem:[#allocation5 + $0x88] sm:$0xff]  ;;  %v78_v18 = vld [vmem:[#allocation5 + $0x50] sm:$0xff]  ;;  %v83_v19 = vld [vmem:[#allocation5 + $0x78] sm:$0xff] }
  0x16   :  { %109 = vmatpush.msra.mxu0 %v92_v3  ;;  %411 = vmatpush.msra.mxu2 %v92_v3  ;;  %v76_v20 = vld [vmem:[#allocation5 + $0x40] sm:$0xff]  ;;  %v81_v21 = vld [vmem:[#allocation5 + $0x68] sm:$0xff]  ;;  %v74_v22 = vld [vmem:[#allocation5 + $0x30] sm:$0xff] }
  0x17   :  { %150 = vmatpush.msra.mxu1 %v93_v9  ;;  %427 = vmatpush.msra.mxu3 %v93_v9  ;;  %v79_v23 = vld [vmem:[#allocation5 + $0x58] sm:$0xff]  ;;  %v72_v24 = vld [vmem:[#allocation5 + $0x20] sm:$0xff]  ;;  %v77_v25 = vld [vmem:[#allocation5 + $0x48] sm:$0xff] }
  0x18   :  { %110 = vmatpush.msra.mxu0 %v90_v6  ;;  %412 = vmatpush.msra.mxu2 %v90_v6  ;;  %v70_v26 = vld [vmem:[#allocation5 + $0x10] sm:$0xff]  ;;  %v75_v27 = vld [vmem:[#allocation5 + $0x38] sm:$0xff]  ;;  %v68_v28 = vld [vmem:[#allocation5] sm:$0xff] }
  0x19   :  { %151 = vmatpush.msra.mxu1 %v91_v11  ;;  %428 = vmatpush.msra.mxu3 %v91_v11  ;;  %v60_v29 = vld [vmem:[#allocation2] sm:$0xff]  ;;  %v73_v31 = vld [vmem:[#allocation5 + $0x28] sm:$0xff]  ;;  %v71_v32 = vld [vmem:[#allocation5 + $0x18] sm:$0xff] }
  0x1a   :  { %111 = vmatpush.msra.mxu0 %v88_v8  ;;  %413 = vmatpush.msra.mxu2 %v88_v8  ;;  %v64_v30 = vld [vmem:[#allocation2 + $0x20] sm:$0xff]  ;;  %v69_v33 = vld [vmem:[#allocation5 + $0x8] sm:$0xff]  ;;  %v62_v36 = vld [vmem:[#allocation2 + $0x10] sm:$0xff] }
  0x1b   :  { %152 = vmatpush.msra.mxu1 %v89_v13  ;;  %429 = vmatpush.msra.mxu3 %v89_v13  ;;  %v61_v34 = vld [vmem:[#allocation2 + $0x8] sm:$0xff]  ;;  %v66_v37 = vld [vmem:[#allocation2 + $0x30] sm:$0xff]  ;;  %v63_v38 = vld [vmem:[#allocation2 + $0x18] sm:$0xff] }
  0x1c   :  { %112 = vmatpush.msra.mxu0 %v86_v10  ;;  %414 = vmatpush.msra.mxu2 %v86_v10  ;;  %v65_v35 = vld [vmem:[#allocation2 + $0x28] sm:$0xff]  ;;  %v67_v39 = vld [vmem:[#allocation2 + $0x38] sm:$0xff]  ;;  %v100_v40 = vld [vmem:[#allocation7] sm:$0x3] }
  0x1d   :  { %153 = vmatpush.msra.mxu1 %v87_v15  ;;  %430 = vmatpush.msra.mxu3 %v87_v15  ;;  %v638_v41 = vperm.slane %v100_v40, 0  ;;  %v643_v51 = vperm.slane %v100_v40, 1 }
  0x1e   :  { %113 = vmatpush.msra.mxu0 %v84_v12  ;;  %415 = vmatpush.msra.mxu2 %v84_v12 }
  0x1f   :  { %154 = vmatpush.msra.mxu1 %v85_v17  ;;  %431 = vmatpush.msra.mxu3 %v85_v17 }
  0x20   :  { %114 = vmatpush.msra.mxu0 %v82_v14  ;;  %416 = vmatpush.msra.mxu2 %v82_v14 }
  0x21   :  { %155 = vmatpush.msra.mxu1 %v83_v19  ;;  %432 = vmatpush.msra.mxu3 %v83_v19 }
  0x22   :  { %115 = vmatpush.msra.mxu0 %v80_v16  ;;  %417 = vmatpush.msra.mxu2 %v80_v16 }
  0x23   :  { %156 = vmatpush.msra.mxu1 %v81_v21  ;;  %433 = vmatpush.msra.mxu3 %v81_v21 }
  0x24   :  { %116 = vmatpush.msra.mxu0 %v78_v18  ;;  %418 = vmatpush.msra.mxu2 %v78_v18 }
  0x25   :  { %157 = vmatpush.msra.mxu1 %v79_v23  ;;  %434 = vmatpush.msra.mxu3 %v79_v23 }
  0x26   :  { %117 = vmatpush.msra.mxu0 %v76_v20  ;;  %419 = vmatpush.msra.mxu2 %v76_v20 }
  0x27   :  { %158 = vmatpush.msra.mxu1 %v77_v25  ;;  %435 = vmatpush.msra.mxu3 %v77_v25 }
  0x28   :  { %118 = vmatpush.msra.mxu0 %v74_v22  ;;  %420 = vmatpush.msra.mxu2 %v74_v22 }
  0x29   :  { %159 = vmatpush.msra.mxu1 %v75_v27  ;;  %436 = vmatpush.msra.mxu3 %v75_v27 }
  0x2a   :  { %119 = vmatpush.msra.mxu0 %v72_v24  ;;  %421 = vmatpush.msra.mxu2 %v72_v24 }
  0x2b   :  { %160 = vmatpush.msra.mxu1 %v73_v31  ;;  %437 = vmatpush.msra.mxu3 %v73_v31 }
  0x2c   :  { %120 = vmatpush.msra.mxu0 %v70_v26  ;;  %422 = vmatpush.msra.mxu2 %v70_v26 }
  0x2d   :  { %161 = vmatpush.msra.mxu1 %v71_v32  ;;  %438 = vmatpush.msra.mxu3 %v71_v32 }
  0x2e   :  { %121 = vmatpush.msra.mxu0 %v68_v28  ;;  %423 = vmatpush.msra.mxu2 %v68_v28 }
  0x2f   :  { %122 = vmatmul.f32.vlgmr.msra.gmra.mxu0 %v60_v29  ;;  %134 = vmatmul.f32.vlgmr.msra.gmra.mxu2 %v64_v30 }
  0x30   :  { %162 = vmatpush.msra.mxu1 %v69_v33  ;;  %439 = vmatpush.msra.mxu3 %v69_v33 }
  0x31   :  { %163 = vmatmul.f32.vlgmr.msra.gmra.mxu1 %v60_v29  ;;  %175 = vmatmul.f32.vlgmr.msra.gmra.mxu3 %v64_v30 }
  0x37   :  { %125 = vmatmul.f32.gmra.mxu0 %v61_v34  ;;  %137 = vmatmul.f32.gmra.mxu2 %v65_v35 }
  0x39   :  { %166 = vmatmul.f32.gmra.mxu1 %v61_v34  ;;  %178 = vmatmul.f32.gmra.mxu3 %v65_v35 }
  0x3f   :  { %128 = vmatmul.f32.gmra.mxu0 %v62_v36  ;;  %140 = vmatmul.f32.gmra.mxu2 %v66_v37 }
  0x41   :  { %169 = vmatmul.f32.gmra.mxu1 %v62_v36  ;;  %181 = vmatmul.f32.gmra.mxu3 %v66_v37 }
  0x47   :  { %131 = vmatmul.f32.gmra.mxu0 %v63_v38  ;;  %143 = vmatmul.f32.gmra.mxu2 %v67_v39 }
  0x49   :  { %172 = vmatmul.f32.gmra.mxu1 %v63_v38  ;;  %184 = vmatmul.f32.gmra.mxu3 %v67_v39 }
  0xac   :  { %v123_v42 = vpop.f32.mrf.mxu0 }
  0xad   :  { %v124_v43 = vadd.f32 %v123_v42, %v638_v41 }
  0xae   :  { %v164_v46 = vpop.f32.mrf.mxu1 }
  0xaf   :  { %v400_v44 = vmul.f32 -1.442695, %v124_v43  ;;  %v165_v56 = vadd.f32 %v164_v46, %v643_v51 }
  0xb1   :  { %448 = vpow2.f32 %v400_v44 }
  0xb2   :  { %v135_v45 = vpop.f32.mrf.mxu2 }
  0xb3   :  { %v136_v47 = vadd.f32 %v135_v45, %v638_v41 }
  0xb4   :  { %v126_v48 = vpop.f32.mrf.mxu0  ;;  %v176_v58 = vpop.f32.mrf.mxu3 }
  0xb5   :  { %v404_v49 = vmul.f32 -1.442695, %v136_v47  ;;  %v127_v50 = vadd.f32 %v126_v48, %v638_v41  ;;  %v177_v4 = vadd.f32 %v176_v58, %v643_v51 }
  0xb6   :  { %v167_v59 = vpop.f32.mrf.mxu1 }
  0xb7   :  { %v449_v52 = vpop.eup %448  ;;  %450 = vpow2.f32 %v404_v49  ;;  %v401_v53 = vmul.f32 -1.442695, %v127_v50  ;;  %v168_v8 = vadd.f32 %v167_v59, %v643_v51 }
  0xb8   :  { %v212_v54 = vadd.f32 1.0, %v449_v52 }
  0xb9   :  { %452 = vpow2.f32 %v401_v53 }
  0xba   :  { %454 = vrcp.f32 %v212_v54  ;;  %v138_v55 = vpop.f32.mrf.mxu2  ;;  %v229_v3 = vand.u32 2147483647, %v212_v54  ;;  %v231_v7 = vand.u32 2147483648, %v212_v54  ;;  %vm225_vm0 = vweird.f32 %v212_v54 }
  0xbb   :  { %v139_v57 = vadd.f32 %v138_v55, %v638_v41  ;;  %456 = vtanh.f32 %v165_v56 }
  0xbc   :  { %v129_v60 = vpop.f32.mrf.mxu0  ;;  %vm659_vm1 = vcmp.eq.f32.partialorder %v229_v3, 8.507059e+37  ;;  %v232_v17 = vor.u32 1.1754944e-38, %v231_v7  ;;  %v179_v23 = vpop.f32.mrf.mxu3 }
  0xbd   :  { %v451_v61 = vpop.eup %450  ;;  %v405_v62 = vmul.f32 -1.442695, %v139_v57  ;;  %v130_v63 = vadd.f32 %v129_v60, %v638_v41  ;;  %v180_v37 = vadd.f32 %v179_v23, %v643_v51 }
  0xbe   :  { %v648_v0 = vadd.f32 1.0, %v451_v61  ;;  %v170_v24 = vpop.f32.mrf.mxu1 }
  0xbf   :  { %v453_v1 = vpop.eup %452  ;;  %458 = vpow2.f32 %v405_v62  ;;  %v402_v2 = vmul.f32 -1.442695, %v130_v63  ;;  %v171_v38 = vadd.f32 %v170_v24, %v643_v51 }
  0xc0   :  { %v455_v5 = vpop.eup %454  ;;  %460 = vrcp.f32 %v648_v0  ;;  %v652_v6 = vadd.f32 1.0, %v453_v1  ;;  %v291_v11 = vand.u32 2147483648, %v648_v0  ;;  %v289_v14 = vand.u32 2147483647, %v648_v0 }
  0xc1   :  { %v221_v9 = vmul.f32 %v455_v5, %v212_v54  ;;  %462 = vpow2.f32 %v402_v2  ;;  %v457_v15 = vpop.eup %456  ;;  %vm226_vm2 = vweird.f32 %v455_v5  ;;  %vm285_vm3 = vweird.f32 %v648_v0 }
  0xc2   :  { %464 = vrcp.f32 %v652_v6  ;;  %v141_v10 = vpop.f32.mrf.mxu2  ;;  %v292_v27 = vor.u32 1.1754944e-38, %v291_v11  ;;  %vm240_vm4 = vweird.f32 %v652_v6  ;;  %v244_v28 = vand.u32 2147483647, %v652_v6  ;;  %vm227_vm6 = vmor %vm225_vm0, %vm226_vm2 }
  0xc3   :  { %v222_v12 = vsub.f32 1.0, %v221_v9  ;;  %v142_v13 = vadd.f32 %v141_v10, %v638_v41  ;;  %466 = vtanh.f32 %v177_v4  ;;  %v246_v29 = vand.u32 2147483648, %v652_v6 }
  0xc4   :  { %v132_v18 = vpop.f32.mrf.mxu0  ;;  %468 = vtanh.f32 %v168_v8  ;;  %vm671_vm5 = vcmp.eq.f32.partialorder %v289_v14, 8.507059e+37  ;;  %vm691_vm8 = vcmp.eq.f32.partialorder %v244_v28, 8.507059e+37  ;;  %v182_v14 = vpop.f32.mrf.mxu3 }
  0xc5   :  { %v459_v19 = vpop.eup %458  ;;  %v223_v20 = vmul.f32 %v455_v5, %v222_v12  ;;  %v406_v21 = vmul.f32 -1.442695, %v142_v13  ;;  %v133_v22 = vadd.f32 %v132_v18, %v638_v41  ;;  %v247_v54 = vor.u32 1.1754944e-38, %v246_v29 }
  0xc6   :  { %v461_v25 = vpop.eup %460  ;;  %v665_v26 = vadd.f32 1.0, %v459_v19 }
  0xc7   :  { %v463_v30 = vpop.eup %462  ;;  %v281_v31 = vmul.f32 %v461_v25, %v648_v0  ;;  %470 = vpow2.f32 %v406_v21  ;;  %v224_v32 = vadd.f32 %v455_v5, %v223_v20  ;;  %v403_v33 = vmul.f32 -1.442695, %v133_v22 }
  0xc8   :  { %v675_v35 = vpop.eup %464  ;;  %472 = vrcp.f32 %v665_v26  ;;  %v678_v36 = vadd.f32 1.0, %v463_v30  ;;  %vm286_vm7 = vweird.f32 %v461_v25  ;;  %v304_v48 = vand.u32 2147483647, %v665_v26 }
  0xc9   :  { %v467_v39 = vpop.eup %466  ;;  %v282_v40 = vsub.f32 1.0, %v281_v31  ;;  %v236_v42 = vmul.f32 %v675_v35, %v652_v6  ;;  %v228_v43 = vsel %vm227_vm6, %v455_v5, %v224_v32  ;;  %474 = vpow2.f32 %v403_v33  ;;  %vm287_vm11 = vmor %vm285_vm3, %vm286_vm7 }
  0xca   :  { %v686_v44 = vpop.eup %468  ;;  %476 = vrcp.f32 %v678_v36  ;;  %v233_v45 = vsel %vm659_vm1, %v232_v17, %v228_v43  ;;  %v144_v46 = vpop.f32.mrf.mxu2  ;;  %vm241_vm9 = vweird.f32 %v675_v35  ;;  %v306_v55 = vand.u32 2147483648, %v665_v26 }
  0xcb   :  { %v283_v49 = vmul.f32 %v461_v25, %v282_v40  ;;  %v237_v50 = vsub.f32 1.0, %v236_v42  ;;  %v348_v52 = vsub.f32 1.0, %v233_v45  ;;  %v145_v53 = vadd.f32 %v144_v46, %v638_v41  ;;  %vm242_vm14 = vmor %vm240_vm4, %vm241_vm9 }
  0xcc   :  { %478 = vtanh.f32 %v180_v37  ;;  %vm300_vm10 = vweird.f32 %v665_v26  ;;  %v307_v41 = vor.u32 1.1754944e-38, %v306_v55  ;;  %vm255_vm12 = vweird.f32 %v678_v36  ;;  %v173_v37 = vpop.f32.mrf.mxu1 }
  0xcd   :  { %v471_v56 = vpop.eup %470  ;;  %v238_v57 = vmul.f32 %v675_v35, %v237_v50  ;;  %v356_v58 = vmul.f32 %v457_v15, %v348_v52  ;;  %v284_v59 = vadd.f32 %v461_v25, %v283_v49  ;;  %v407_v60 = vmul.f32 -1.442695, %v145_v53  ;;  %v185_v53 = vpop.f32.mrf.mxu3 }
  0xce   :  { %v473_v61 = vpop.eup %472  ;;  %v701_v62 = vadd.f32 1.0, %v471_v56  ;;  %v259_v63 = vand.u32 2147483647, %v678_v36  ;;  %vm709_vm13 = vcmp.eq.f32.partialorder %v304_v48, 8.507059e+37  ;;  %v261_v13 = vand.u32 2147483648, %v678_v36 }
  0xcf   :  { %v475_v1 = vpop.eup %474  ;;  %v296_v2 = vmul.f32 %v473_v61, %v665_v26  ;;  %v364_v3 = vmax.f32 %v356_v58, 0.0  ;;  %v288_v4 = vsel %vm287_vm11, %v461_v25, %v284_v59  ;;  %480 = vpow2.f32 %v407_v60 }
  0xd0   :  { %v477_v7 = vpop.eup %476  ;;  %482 = vrcp.f32 %v701_v62  ;;  %v714_v0 = vadd.f32 1.0, %v475_v1  ;;  %v293_v8 = vsel %vm671_vm5, %v292_v27, %v288_v4  ;;  %v239_v9 = vadd.f32 %v675_v35, %v238_v57 }
  0xd1   :  { %v297_v10 = vsub.f32 1.0, %v296_v2  ;;  %v251_v11 = vmul.f32 %v477_v7, %v678_v36  ;;  %372 = vst [vmem:[#allocation8] sm:$0xff] %v364_v3  ;;  %v352_v12 = vsub.f32 1.0, %v293_v8  ;;  %vm301_vm15 = vweird.f32 %v473_v61 }
  0xd2   :  { %v479_v15 = vpop.eup %478  ;;  %484 = vrcp.f32 %v714_v0  ;;  %v243_v16 = vsel %vm242_vm14, %v675_v35, %v239_v9  ;;  %vm727_vm0 = vcmp.eq.f32.partialorder %v259_v63, 8.507059e+37  ;;  %vm256_vm1 = vweird.f32 %v477_v7  ;;  %vm302_vm2 = vmor %vm300_vm10, %vm301_vm15 }
  0xd3   :  { %v298_v18 = vmul.f32 %v473_v61, %v297_v10  ;;  %v252_v19 = vsub.f32 1.0, %v251_v11  ;;  %v360_v20 = vmul.f32 %v467_v39, %v352_v12  ;;  %v248_v6 = vsel %vm691_vm8, %v247_v54, %v243_v16  ;;  %vm257_vm4 = vmor %vm255_vm12, %vm256_vm1 }
  0xd4   :  { %v349_v21 = vsub.f32 1.0, %v248_v6  ;;  %486 = vtanh.f32 %v171_v38  ;;  %v183_v22 = vadd.f32 %v182_v14, %v643_v51  ;;  %v262_v28 = vor.u32 1.1754944e-38, %v261_v13 }
  0xd5   :  { %v481_v23 = vpop.eup %480  ;;  %v253_v24 = vmul.f32 %v477_v7, %v252_v19  ;;  %v368_v25 = vmax.f32 %v360_v20, 0.0  ;;  %v299_v27 = vadd.f32 %v473_v61, %v298_v18  ;;  %vm315_vm3 = vweird.f32 %v701_v62 }
  0xd6   :  { %v483_v29 = vpop.eup %482  ;;  %v734_v30 = vadd.f32 1.0, %v481_v23  ;;  %v357_v31 = vmul.f32 %v686_v44, %v349_v21  ;;  %v319_v32 = vand.u32 2147483647, %v701_v62  ;;  %488 = vtanh.f32 %v183_v22 }
  0xd7   :  { %v311_v33 = vmul.f32 %v483_v29, %v701_v62  ;;  %376 = vst [vmem:[#allocation8 + $0x20] sm:$0xff] %v368_v25  ;;  %v303_v34 = vsel %vm302_vm2, %v473_v61, %v299_v27  ;;  %v254_v35 = vadd.f32 %v477_v7, %v253_v24  ;;  %v321_v26 = vand.u32 2147483648, %v701_v62 }
  0xd8   :  { %v485_v38 = vpop.eup %484  ;;  %490 = vrcp.f32 %v734_v30  ;;  %v365_v39 = vmax.f32 %v357_v31, 0.0  ;;  %v308_v40 = vsel %vm709_vm13, %v307_v41, %v303_v34  ;;  %vm316_vm5 = vweird.f32 %v483_v29 }
  0xd9   :  { %v312_v42 = vsub.f32 1.0, %v311_v33  ;;  %v266_v43 = vmul.f32 %v485_v38, %v714_v0  ;;  %v353_v44 = vsub.f32 1.0, %v308_v40  ;;  %v258_v45 = vsel %vm257_vm4, %v477_v7, %v254_v35  ;;  %vm317_vm8 = vmor %vm315_vm3, %vm316_vm5 }
  0xda   :  { %v487_v46 = vpop.eup %486  ;;  %373 = vst [vmem:[#allocation8 + $0x8] sm:$0xff] %v365_v39  ;;  %v263_v47 = vsel %vm727_vm0, %v262_v28, %v258_v45  ;;  %v174_v48 = vadd.f32 %v173_v37, %v643_v51  ;;  %vm270_vm6 = vweird.f32 %v714_v0  ;;  %vm271_vm7 = vweird.f32 %v485_v38 }
  0xdb   :  { %v313_v49 = vmul.f32 %v483_v29, %v312_v42  ;;  %v267_v36 = vsub.f32 1.0, %v266_v43  ;;  %v361_v50 = vmul.f32 %v479_v15, %v353_v44  ;;  %v350_v52 = vsub.f32 1.0, %v263_v47  ;;  %vm272_vm10 = vmor %vm270_vm6, %vm271_vm7 }
  0xdc   :  { %v274_v54 = vand.u32 2147483647, %v714_v0  ;;  %v276_v55 = vand.u32 2147483648, %v714_v0  ;;  %492 = vtanh.f32 %v174_v48  ;;  %v489_v56 = vpop.eup %488  ;;  %vm320_vm9 = vcmp.eq.f32.partialorder %v319_v32, 8.507059e+37 }
  0xdd   :  { %v268_v57 = vmul.f32 %v485_v38, %v267_v36  ;;  %v369_v58 = vmax.f32 %v361_v50, 0.0  ;;  %v358_v59 = vmul.f32 %v487_v46, %v350_v52  ;;  %v314_v60 = vadd.f32 %v483_v29, %v313_v49 }
  0xde   :  { %v491_v61 = vpop.eup %490  ;;  %v322_v41 = vor.u32 1.1754944e-38, %v321_v26  ;;  %v186_v63 = vadd.f32 %v185_v53, %v643_v51  ;;  %v277_v7 = vor.u32 1.1754944e-38, %v276_v55  ;;  %vm275_vm11 = vcmp.eq.f32.partialorder %v274_v54, 8.507059e+37 }
  0xdf   :  { %v326_v1 = vmul.f32 %v491_v61, %v734_v30  ;;  %377 = vst [vmem:[#allocation8 + $0x28] sm:$0xff] %v369_v58  ;;  %v366_v2 = vmax.f32 %v358_v59, 0.0  ;;  %v318_v3 = vsel %vm317_vm8, %v483_v29, %v314_v60  ;;  %v269_v4 = vadd.f32 %v485_v38, %v268_v57 }
  0xe0   :  { %v323_v5 = vsel %vm320_vm9, %v322_v41, %v318_v3  ;;  %vm331_vm12 = vweird.f32 %v491_v61  ;;  %v336_v51 = vand.u32 2147483648, %v734_v30  ;;  %494 = vtanh.f32 %v186_v63 }
  0xe1   :  { %v327_v8 = vsub.f32 1.0, %v326_v1  ;;  %374 = vst [vmem:[#allocation8 + $0x10] sm:$0xff] %v366_v2  ;;  %v354_v62 = vsub.f32 1.0, %v323_v5  ;;  %v273_v9 = vsel %vm272_vm10, %v485_v38, %v269_v4  ;;  %v334_v15 = vand.u32 2147483647, %v734_v30 }
  0xe2   :  { %v493_v10 = vpop.eup %492  ;;  %v278_v11 = vsel %vm275_vm11, %v277_v7, %v273_v9  ;;  %vm330_vm13 = vweird.f32 %v734_v30  ;;  %v337_v18 = vor.u32 1.1754944e-38, %v336_v51 }
  0xe3   :  { %v328_v12 = vmul.f32 %v491_v61, %v327_v8  ;;  %v362_v13 = vmul.f32 %v489_v56, %v354_v62  ;;  %v351_v14 = vsub.f32 1.0, %v278_v11  ;;  %vm332_vm14 = vmor %vm330_vm13, %vm331_vm12  ;;  %vm335_vm15 = vcmp.eq.f32.partialorder %v334_v15, 8.507059e+37 }
  0xe5   :  { %v370_v16 = vmax.f32 %v362_v13, 0.0  ;;  %v359_v0 = vmul.f32 %v493_v10, %v351_v14  ;;  %v329_v17 = vadd.f32 %v491_v61, %v328_v12 }
  0xe6   :  { %v495_v6 = vpop.eup %494 }
  0xe7   :  { %378 = vst [vmem:[#allocation8 + $0x30] sm:$0xff] %v370_v16  ;;  %v367_v19 = vmax.f32 %v359_v0, 0.0  ;;  %v333_v20 = vsel %vm332_vm14, %v491_v61, %v329_v17 }
  0xe8   :  { %v338_v21 = vsel %vm335_vm15, %v337_v18, %v333_v20 }
  0xe9   :  { %375 = vst [vmem:[#allocation8 + $0x18] sm:$0xff] %v367_v19  ;;  %v355_v22 = vsub.f32 1.0, %v338_v21 }
  0xeb   :  { %v363_v23 = vmul.f32 %v495_v6, %v355_v22 }
  0xed   :  { %v371_v24 = vmax.f32 %v363_v23, 0.0 }
  0xef   :  { %379 = vst [vmem:[#allocation8 + $0x38] sm:$0xff] %v371_v24 }
  0xf0   :  { %392 = dma.vmem_to_hbm [thread:$0]  %s385_s29, 1024, %s387_s5, [#allocation4], %s602_s24, %s602_s24, %s603_s25  }
  0xf1   :  { %596 = dma.done.wait [#allocation4], 1024  }
  0xf2   :  { %597 = vsyncadd [#allocation4], 4294966272 }
  0xf3   :  { %397 = vsyncpa [#allocation3], 1 }
  0xf4   :  { %398 = vsyncpa [#allocation6], 1 }
  0xf5   :  { %399 = vsyncpa [#allocation4], 1 }

</bundles_post_ra>
